<compile_context>
chip_gen: v6e
topology: v6e:2x2x1
jax: 0.10.0
libtpu: 0.0.40
codegen_flags: <defaults>
</compile_context>

<pallas_src>
import functools
import math

import jax
import jax.numpy as jnp
from jax import lax
from jax.experimental import pallas as pl
from jax.experimental.pallas import tpu as pltpu


def _layer_norm(x, gamma, beta, eps=1e-5):
    mu = jnp.mean(x, axis=-1, keepdims=True)
    xc = x - mu
    var = jnp.mean(xc * xc, axis=-1, keepdims=True)
    inv = lax.rsqrt(var + eps)
    return xc * inv * gamma + beta


def _gelu_exact(x):
    # nn.GELU() default = exact erf-based GELU.
    return 0.5 * x * (1.0 + lax.erf(x * (1.0 / math.sqrt(2.0))))


def attention_block_kernel(x_ref,
                           ln1g_ref, ln1b_ref,
                           wqkv_ref, bqkv_ref, wo_ref, bo_ref,
                           ln2g_ref, ln2b_ref,
                           w1_ref, b1_ref, w2_ref, b2_ref,
                           o_ref,
                           q_sc, k_sc, v_sc,
                           *, num_heads):
    qi = pl.program_id(1)
    S, E = x_ref.shape
    tq = o_ref.shape[0]
    hd = E // num_heads

    # ---- once per batch element: LN1 + QKV projection for the whole sequence,
    #      cached per-head in VMEM scratch (bf16). Scale is pre-folded into W_q.
    @pl.when(qi == 0)
    def _fill_qkv_cache():
        xf = x_ref[...].astype(jnp.float32)                       # (S, E)
        h = _layer_norm(xf, ln1g_ref[...], ln1b_ref[...])
        qkv = jnp.dot(h.astype(jnp.bfloat16), wqkv_ref[...],
                      preferred_element_type=jnp.float32)
        qkv = qkv + bqkv_ref[...]                                 # (S, 3E) f32
        for hi in range(num_heads):                               # once per batch
            q_sc[hi, :, :] = qkv[:, 0 * E + hi * hd:0 * E + (hi + 1) * hd].astype(jnp.bfloat16)
            k_sc[hi, :, :] = qkv[:, 1 * E + hi * hd:1 * E + (hi + 1) * hd].astype(jnp.bfloat16)
            v_sc[hi, :, :] = qkv[:, 2 * E + hi * hd:2 * E + (hi + 1) * hd].astype(jnp.bfloat16)

    # ---- heads-batched attention for this query tile ----
    q_start = pl.multiple_of(qi * tq, tq)
    qh = q_sc[:, pl.ds(q_start, tq), :]                           # (H, tq, hd) bf16
    kh = k_sc[...]                                                # (H, S,  hd) bf16
    vh = v_sc[...]                                                # (H, S,  hd) bf16

    s = jnp.einsum('hqd,hkd->hqk', qh, kh,
                   preferred_element_type=jnp.float32)            # (H, tq, S)
    s = s - jnp.max(s, axis=-1, keepdims=True)
    p = jnp.exp(s)
    p = p * pl.reciprocal(jnp.sum(p, axis=-1, keepdims=True), approx=True)
    ao = jnp.einsum('hqk,hkd->hqd', p.astype(jnp.bfloat16), vh,
                    preferred_element_type=jnp.float32)           # (H, tq, hd)

    attn = jnp.concatenate([ao[hi] for hi in range(num_heads)], axis=-1)  # (tq, E)
    attn = jnp.dot(attn.astype(jnp.bfloat16), wo_ref[...],
                   preferred_element_type=jnp.float32) + bo_ref[...]

    x_t = x_ref[pl.ds(q_start, tq), :].astype(jnp.float32) + attn  # residual 1

    # ---- LN2 + MLP (Linear -> GELU -> Linear) ----
    h2 = _layer_norm(x_t, ln2g_ref[...], ln2b_ref[...])
    h2 = jnp.dot(h2.astype(jnp.bfloat16), w1_ref[...],
                 preferred_element_type=jnp.float32) + b1_ref[...]
    h2 = _gelu_exact(h2)
    h2 = jnp.dot(h2.astype(jnp.bfloat16), w2_ref[...],
                 preferred_element_type=jnp.float32) + b2_ref[...]

    o_ref[...] = (x_t + h2).astype(o_ref.dtype)                    # residual 2


def attention_block(x, params, num_heads):
    B, S, E = x.shape
    hidden = params["w1"].shape[0]
    hd = E // num_heads

    # ---- host-side parameter prep (one-time in real use) ----
    # Fold softmax scale 1/sqrt(hd) into the Q rows of the in-projection.
    scale = 1.0 / math.sqrt(hd)
    row_scale = jnp.concatenate(
        [jnp.full((E,), scale, jnp.float32), jnp.ones((2 * E,), jnp.float32)])
    wqkv_s = params["wqkv"] * row_scale[:, None]                   # (3E, E)
    bqkv_s = (params["bqkv"] * row_scale[None, :]).astype(jnp.float32)

    # Pre-transpose to (K, N) so the kernel does plain A @ W on the MXU; cast to bf16.
    wqkv_k = wqkv_s.T.astype(jnp.bfloat16)                         # (E, 3E)
    wo_k = params["wo"].T.astype(jnp.bfloat16)                     # (E, E)
    w1_k = params["w1"].T.astype(jnp.bfloat16)                     # (E, hidden)
    w2_k = params["w2"].T.astype(jnp.bfloat16)                     # (hidden, E)

    # Query-tile size.  (For best perf, pad ragged S -- e.g. ViT's 197 -- to a
    # multiple of 128 outside this wrapper and mask padded keys.)
    if S % 128 == 0:
        tq = 128
    else:
        tq = S
    n_qt = S // tq

    def full_spec(shape):
        return pl.BlockSpec(shape, lambda b, qi: (0,) * len(shape))

    in_specs = [
        pl.BlockSpec((None, S, E), lambda b, qi: (b, 0, 0)),       # x (full seq per batch)
        full_spec((1, E)), full_spec((1, E)),                      # ln1 gamma/beta
        full_spec((E, 3 * E)), full_spec((1, 3 * E)),              # in_proj W/b (pre-T, scaled)
        full_spec((E, E)), full_spec((1, E)),                      # out_proj W/b
        full_spec((1, E)), full_spec((1, E)),                      # ln2 gamma/beta
        full_spec((E, hidden)), full_spec((1, hidden)),            # fc1 W/b
        full_spec((hidden, E)), full_spec((1, E)),                 # fc2 W/b
    ]
    out_spec = pl.BlockSpec((None, tq, E), lambda b, qi: (b, qi, 0))

    scratch_shapes = [
        pltpu.VMEM((num_heads, S, hd), jnp.bfloat16),              # Q cache
        pltpu.VMEM((num_heads, S, hd), jnp.bfloat16),              # K cache
        pltpu.VMEM((num_heads, S, hd), jnp.bfloat16),              # V cache
    ]

    kernel = functools.partial(attention_block_kernel, num_heads=num_heads)
    return pl.pallas_call(
        kernel,
        out_shape=jax.ShapeDtypeStruct((B, S, E), x.dtype),
        grid_spec=pltpu.PrefetchScalarGridSpec(
            num_scalar_prefetch=0,
            grid=(B, n_qt),
            in_specs=in_specs,
            out_specs=out_spec,
            scratch_shapes=scratch_shapes,
        ),
        compiler_params=pltpu.CompilerParams(
            dimension_semantics=("parallel", "arbitrary"),
            vmem_limit_bytes=64 * 1024 * 1024),
    )(x,
      params["ln1_g"], params["ln1_b"],
      wqkv_k, bqkv_s, wo_k, params["bo"],
      params["ln2_g"], params["ln2_b"],
      w1_k, params["b1"], w2_k, params["b2"])


def attention_block_ref(x, params, num_heads):
    """Pure-JAX f32 reference matching the PyTorch module."""
    B, S, E = x.shape
    hd = E // num_heads

    def ln(v, g, b):
        mu = jnp.mean(v, -1, keepdims=True)
        var = jnp.mean((v - mu) ** 2, -1, keepdims=True)
        return (v - mu) * lax.rsqrt(var + 1e-5) * g + b

    h = ln(x, params["ln1_g"], params["ln1_b"])
    qkv = h @ params["wqkv"].T + params["bqkv"]                    # (B,S,3E)
    q, k, v = jnp.split(qkv, 3, axis=-1)

    def heads(t):
        return t.reshape(B, S, num_heads, hd).transpose(0, 2, 1, 3)

    qh, kh, vh = heads(q), heads(k), heads(v)
    scores = jnp.einsum("bhqd,bhkd->bhqk", qh, kh) / math.sqrt(hd)
    p = jax.nn.softmax(scores, axis=-1)
    o = jnp.einsum("bhqk,bhkd->bhqd", p, vh).transpose(0, 2, 1, 3).reshape(B, S, E)
    x = x + (o @ params["wo"].T + params["bo"])

    h2 = ln(x, params["ln2_g"], params["ln2_b"])
    h2 = h2 @ params["w1"].T + params["b1"]
    h2 = 0.5 * h2 * (1.0 + lax.erf(h2 / math.sqrt(2.0)))
    h2 = h2 @ params["w2"].T + params["b2"]
    return x + h2


def make_params(key, emb_dim, hidden_dim):
    """Parameters in PyTorch layout (out_features, in_features), f32."""
    ks = jax.random.split(key, 8)
    s = 0.05
    return {
        "ln1_g": jnp.ones((1, emb_dim), jnp.float32),
        "ln1_b": jnp.zeros((1, emb_dim), jnp.float32),
        "wqkv": jax.random.normal(ks[0], (3 * emb_dim, emb_dim), jnp.float32) * s,
        "bqkv": jax.random.normal(ks[1], (1, 3 * emb_dim), jnp.float32) * s,
        "wo":   jax.random.normal(ks[2], (emb_dim, emb_dim), jnp.float32) * s,
        "bo":   jax.random.normal(ks[3], (1, emb_dim), jnp.float32) * s,
        "ln2_g": jnp.ones((1, emb_dim), jnp.float32),
        "ln2_b": jnp.zeros((1, emb_dim), jnp.float32),
        "w1":   jax.random.normal(ks[4], (hidden_dim, emb_dim), jnp.float32) * s,
        "b1":   jax.random.normal(ks[5], (1, hidden_dim), jnp.float32) * s,
        "w2":   jax.random.normal(ks[6], (emb_dim, hidden_dim), jnp.float32) * s,
        "b2":   jax.random.normal(ks[7], (1, emb_dim), jnp.float32) * s,
    }


if __name__ == "__main__":
    B, S, E, H, HIDDEN = 2, 8, 32, 4, 64   # small shapes consistent with the module
    key = jax.random.PRNGKey(0)
    kx, kp = jax.random.split(key)
    x = jax.random.normal(kx, (B, S, E), jnp.float32)
    params = make_params(kp, E, HIDDEN)

    out = attention_block(x, params, num_heads=H)
    out = jax.block_until_ready(out)

    ref = attention_block_ref(x, params, num_heads=H)
    assert out.shape == (B, S, E)
    max_err = float(jnp.max(jnp.abs(out - ref)))
    assert jnp.allclose(out, ref, atol=3e-2, rtol=3e-2), (
        f"mismatch vs JAX reference, max|err|={max_err}")

    print("KERNEL_OK")
</pallas_src>

<mosaic_0001>
module attributes {stable_mosaic.version = 11 : i64} {
  func.func @attention_block_kernel(%arg0: i32, %arg1: i32, %arg2: memref<1x8x32xf32, #tpu.memory_space<vmem>>, %arg3: memref<1x32xf32, #tpu.memory_space<vmem>>, %arg4: memref<1x32xf32, #tpu.memory_space<vmem>>, %arg5: memref<32x96xbf16, #tpu.memory_space<vmem>>, %arg6: memref<1x96xf32, #tpu.memory_space<vmem>>, %arg7: memref<32x32xbf16, #tpu.memory_space<vmem>>, %arg8: memref<1x32xf32, #tpu.memory_space<vmem>>, %arg9: memref<1x32xf32, #tpu.memory_space<vmem>>, %arg10: memref<1x32xf32, #tpu.memory_space<vmem>>, %arg11: memref<32x64xbf16, #tpu.memory_space<vmem>>, %arg12: memref<1x64xf32, #tpu.memory_space<vmem>>, %arg13: memref<64x32xbf16, #tpu.memory_space<vmem>>, %arg14: memref<1x32xf32, #tpu.memory_space<vmem>>, %arg15: memref<1x8x32xf32, #tpu.memory_space<vmem>>, %arg16: memref<4x8x8xbf16, #tpu.memory_space<vmem>>, %arg17: memref<4x8x8xbf16, #tpu.memory_space<vmem>>, %arg18: memref<4x8x8xbf16, #tpu.memory_space<vmem>>) attributes {dimension_semantics = [#tpu.dimension_semantics<parallel>, #tpu.dimension_semantics<arbitrary>], iteration_bounds = array<i64: 2, 1>, scalar_prefetch = 0 : i64, scratch_operands = 3 : i64, tpu.core_type = #tpu.core_type<tc>, window_params = [{transform_indices = @transform_0, window_bounds = array<i64: 1, 8, 32>}, {pipeline_mode = #tpu.pipeline_mode<synchronous>, transform_indices = @transform_1, window_bounds = array<i64: 1, 32>}, {pipeline_mode = #tpu.pipeline_mode<synchronous>, transform_indices = @transform_2, window_bounds = array<i64: 1, 32>}, {pipeline_mode = #tpu.pipeline_mode<synchronous>, transform_indices = @transform_3, window_bounds = array<i64: 32, 96>}, {pipeline_mode = #tpu.pipeline_mode<synchronous>, transform_indices = @transform_4, window_bounds = array<i64: 1, 96>}, {pipeline_mode = #tpu.pipeline_mode<synchronous>, transform_indices = @transform_5, window_bounds = array<i64: 32, 32>}, {pipeline_mode = #tpu.pipeline_mode<synchronous>, transform_indices = @transform_6, window_bounds = array<i64: 1, 32>}, {pipeline_mode = #tpu.pipeline_mode<synchronous>, transform_indices = @transform_7, window_bounds = array<i64: 1, 32>}, {pipeline_mode = #tpu.pipeline_mode<synchronous>, transform_indices = @transform_8, window_bounds = array<i64: 1, 32>}, {pipeline_mode = #tpu.pipeline_mode<synchronous>, transform_indices = @transform_9, window_bounds = array<i64: 32, 64>}, {pipeline_mode = #tpu.pipeline_mode<synchronous>, transform_indices = @transform_10, window_bounds = array<i64: 1, 64>}, {pipeline_mode = #tpu.pipeline_mode<synchronous>, transform_indices = @transform_11, window_bounds = array<i64: 64, 32>}, {pipeline_mode = #tpu.pipeline_mode<synchronous>, transform_indices = @transform_12, window_bounds = array<i64: 1, 32>}, {transform_indices = @transform_13, window_bounds = array<i64: 1, 8, 32>}]} {
    %c0_i32 = arith.constant 0 : i32
    %0 = arith.cmpi eq, %arg1, %c0_i32 : i32
    %1 = arith.extui %0 : i1 to i32
    %c0_i32_0 = arith.constant 0 : i32
    %2 = arith.cmpi ne, %1, %c0_i32_0 : i32
    scf.if %2 {
      %c0_43 = arith.constant 0 : index
      %c0_44 = arith.constant 0 : index
      %c0_45 = arith.constant 0 : index
      %87 = vector.load %arg2[%c0_43, %c0_44, %c0_45] : memref<1x8x32xf32, #tpu.memory_space<vmem>>, vector<1x8x32xf32>
      %88 = vector.shape_cast %87 : vector<1x8x32xf32> to vector<8x32xf32>
      %c0_46 = arith.constant 0 : index
      %c0_47 = arith.constant 0 : index
      %89 = vector.load %arg3[%c0_46, %c0_47] : memref<1x32xf32, #tpu.memory_space<vmem>>, vector<1x32xf32>
      %c0_48 = arith.constant 0 : index
      %c0_49 = arith.constant 0 : index
      %90 = vector.load %arg4[%c0_48, %c0_49] : memref<1x32xf32, #tpu.memory_space<vmem>>, vector<1x32xf32>
      %cst_50 = arith.constant dense<0.000000e+00> : vector<8xf32>
      %91 = vector.multi_reduction <add>, %88, %cst_50 [1] : vector<8x32xf32> to vector<8xf32>
      %92 = vector.shape_cast %91 : vector<8xf32> to vector<8x1xf32>
      %cst_51 = arith.constant 3.200000e+01 : f32
      %93 = vector.broadcast %cst_51 : f32 to vector<8x1xf32>
      %94 = arith.divf %92, %93 : vector<8x1xf32>
      %95 = vector.broadcast %94 : vector<8x1xf32> to vector<8x32xf32>
      %96 = arith.subf %88, %95 : vector<8x32xf32>
      %97 = arith.mulf %96, %96 : vector<8x32xf32>
      %cst_52 = arith.constant dense<0.000000e+00> : vector<8xf32>
      %98 = vector.multi_reduction <add>, %97, %cst_52 [1] : vector<8x32xf32> to vector<8xf32>
      %99 = vector.shape_cast %98 : vector<8xf32> to vector<8x1xf32>
      %cst_53 = arith.constant 3.200000e+01 : f32
      %100 = vector.broadcast %cst_53 : f32 to vector<8x1xf32>
      %101 = arith.divf %99, %100 : vector<8x1xf32>
      %cst_54 = arith.constant 9.99999974E-6 : f32
      %102 = vector.broadcast %cst_54 : f32 to vector<8x1xf32>
      %103 = arith.addf %101, %102 : vector<8x1xf32>
      %104 = math.rsqrt %103 : vector<8x1xf32>
      %105 = vector.broadcast %104 : vector<8x1xf32> to vector<8x32xf32>
      %106 = arith.mulf %96, %105 : vector<8x32xf32>
      %107 = vector.broadcast %89 : vector<1x32xf32> to vector<8x32xf32>
      %108 = arith.mulf %106, %107 : vector<8x32xf32>
      %109 = vector.broadcast %90 : vector<1x32xf32> to vector<8x32xf32>
      %110 = arith.addf %108, %109 : vector<8x32xf32>
      %111 = arith.truncf %110 : vector<8x32xf32> to vector<8x32xbf16>
      %c0_55 = arith.constant 0 : index
      %c0_56 = arith.constant 0 : index
      %112 = vector.load %arg5[%c0_55, %c0_56] : memref<32x96xbf16, #tpu.memory_space<vmem>>, vector<32x96xbf16>
      %cst_57 = arith.constant dense<0.000000e+00> : vector<8x96xf32>
      %113 = tpu.matmul %111, %112, %cst_57 {dimension_numbers = #tpu.dot_dimension_numbers<[1], [0], [0], [1], [0, 0, 1, 1], [], []>} : vector<8x32xbf16>, vector<32x96xbf16>, vector<8x96xf32> -> vector<8x96xf32>
      %c0_58 = arith.constant 0 : index
      %c0_59 = arith.constant 0 : index
      %114 = vector.load %arg6[%c0_58, %c0_59] : memref<1x96xf32, #tpu.memory_space<vmem>>, vector<1x96xf32>
      %115 = vector.broadcast %114 : vector<1x96xf32> to vector<8x96xf32>
      %116 = arith.addf %113, %115 : vector<8x96xf32>
      %117 = vector.extract_strided_slice %116 {offsets = [0, 0], sizes = [8, 8], strides = [1, 1]} : vector<8x96xf32> to vector<8x8xf32>
      %118 = arith.truncf %117 : vector<8x8xf32> to vector<8x8xbf16>
      %c0_60 = arith.constant 0 : index
      %c0_61 = arith.constant 0 : index
      %c0_62 = arith.constant 0 : index
      %119 = vector.load %arg16[%c0_60, %c0_61, %c0_62] : memref<4x8x8xbf16, #tpu.memory_space<vmem>>, vector<1x8x8xbf16>
      %120 = vector.shape_cast %119 : vector<1x8x8xbf16> to vector<8x8xbf16>
      %121 = vector.shape_cast %118 : vector<8x8xbf16> to vector<1x8x8xbf16>
      tpu.vector_store %arg16[%c0_60, %c0_61, %c0_62], %121 {strides = array<i32>} : memref<4x8x8xbf16, #tpu.memory_space<vmem>>, vector<1x8x8xbf16>,
      %122 = vector.extract_strided_slice %116 {offsets = [0, 32], sizes = [8, 8], strides = [1, 1]} : vector<8x96xf32> to vector<8x8xf32>
      %123 = arith.truncf %122 : vector<8x8xf32> to vector<8x8xbf16>
      %c0_63 = arith.constant 0 : index
      %c0_64 = arith.constant 0 : index
      %c0_65 = arith.constant 0 : index
      %124 = vector.load %arg17[%c0_63, %c0_64, %c0_65] : memref<4x8x8xbf16, #tpu.memory_space<vmem>>, vector<1x8x8xbf16>
      %125 = vector.shape_cast %124 : vector<1x8x8xbf16> to vector<8x8xbf16>
      %126 = vector.shape_cast %123 : vector<8x8xbf16> to vector<1x8x8xbf16>
      tpu.vector_store %arg17[%c0_63, %c0_64, %c0_65], %126 {strides = array<i32>} : memref<4x8x8xbf16, #tpu.memory_space<vmem>>, vector<1x8x8xbf16>,
      %127 = vector.extract_strided_slice %116 {offsets = [0, 64], sizes = [8, 8], strides = [1, 1]} : vector<8x96xf32> to vector<8x8xf32>
      %128 = arith.truncf %127 : vector<8x8xf32> to vector<8x8xbf16>
      %c0_66 = arith.constant 0 : index
      %c0_67 = arith.constant 0 : index
      %c0_68 = arith.constant 0 : index
      %129 = vector.load %arg18[%c0_66, %c0_67, %c0_68] : memref<4x8x8xbf16, #tpu.memory_space<vmem>>, vector<1x8x8xbf16>
      %130 = vector.shape_cast %129 : vector<1x8x8xbf16> to vector<8x8xbf16>
      %131 = vector.shape_cast %128 : vector<8x8xbf16> to vector<1x8x8xbf16>
      tpu.vector_store %arg18[%c0_66, %c0_67, %c0_68], %131 {strides = array<i32>} : memref<4x8x8xbf16, #tpu.memory_space<vmem>>, vector<1x8x8xbf16>,
      %132 = vector.extract_strided_slice %116 {offsets = [0, 8], sizes = [8, 8], strides = [1, 1]} : vector<8x96xf32> to vector<8x8xf32>
      %133 = arith.truncf %132 : vector<8x8xf32> to vector<8x8xbf16>
      %c1 = arith.constant 1 : index
      %c0_69 = arith.constant 0 : index
      %c0_70 = arith.constant 0 : index
      %134 = vector.load %arg16[%c1, %c0_69, %c0_70] : memref<4x8x8xbf16, #tpu.memory_space<vmem>>, vector<1x8x8xbf16>
      %135 = vector.shape_cast %134 : vector<1x8x8xbf16> to vector<8x8xbf16>
      %136 = vector.shape_cast %133 : vector<8x8xbf16> to vector<1x8x8xbf16>
      tpu.vector_store %arg16[%c1, %c0_69, %c0_70], %136 {strides = array<i32>} : memref<4x8x8xbf16, #tpu.memory_space<vmem>>, vector<1x8x8xbf16>,
      %137 = vector.extract_strided_slice %116 {offsets = [0, 40], sizes = [8, 8], strides = [1, 1]} : vector<8x96xf32> to vector<8x8xf32>
      %138 = arith.truncf %137 : vector<8x8xf32> to vector<8x8xbf16>
      %c1_71 = arith.constant 1 : index
      %c0_72 = arith.constant 0 : index
      %c0_73 = arith.constant 0 : index
      %139 = vector.load %arg17[%c1_71, %c0_72, %c0_73] : memref<4x8x8xbf16, #tpu.memory_space<vmem>>, vector<1x8x8xbf16>
      %140 = vector.shape_cast %139 : vector<1x8x8xbf16> to vector<8x8xbf16>
      %141 = vector.shape_cast %138 : vector<8x8xbf16> to vector<1x8x8xbf16>
      tpu.vector_store %arg17[%c1_71, %c0_72, %c0_73], %141 {strides = array<i32>} : memref<4x8x8xbf16, #tpu.memory_space<vmem>>, vector<1x8x8xbf16>,
      %142 = vector.extract_strided_slice %116 {offsets = [0, 72], sizes = [8, 8], strides = [1, 1]} : vector<8x96xf32> to vector<8x8xf32>
      %143 = arith.truncf %142 : vector<8x8xf32> to vector<8x8xbf16>
      %c1_74 = arith.constant 1 : index
      %c0_75 = arith.constant 0 : index
      %c0_76 = arith.constant 0 : index
      %144 = vector.load %arg18[%c1_74, %c0_75, %c0_76] : memref<4x8x8xbf16, #tpu.memory_space<vmem>>, vector<1x8x8xbf16>
      %145 = vector.shape_cast %144 : vector<1x8x8xbf16> to vector<8x8xbf16>
      %146 = vector.shape_cast %143 : vector<8x8xbf16> to vector<1x8x8xbf16>
      tpu.vector_store %arg18[%c1_74, %c0_75, %c0_76], %146 {strides = array<i32>} : memref<4x8x8xbf16, #tpu.memory_space<vmem>>, vector<1x8x8xbf16>,
      %147 = vector.extract_strided_slice %116 {offsets = [0, 16], sizes = [8, 8], strides = [1, 1]} : vector<8x96xf32> to vector<8x8xf32>
      %148 = arith.truncf %147 : vector<8x8xf32> to vector<8x8xbf16>
      %c2 = arith.constant 2 : index
      %c0_77 = arith.constant 0 : index
      %c0_78 = arith.constant 0 : index
      %149 = vector.load %arg16[%c2, %c0_77, %c0_78] : memref<4x8x8xbf16, #tpu.memory_space<vmem>>, vector<1x8x8xbf16>
      %150 = vector.shape_cast %149 : vector<1x8x8xbf16> to vector<8x8xbf16>
      %151 = vector.shape_cast %148 : vector<8x8xbf16> to vector<1x8x8xbf16>
      tpu.vector_store %arg16[%c2, %c0_77, %c0_78], %151 {strides = array<i32>} : memref<4x8x8xbf16, #tpu.memory_space<vmem>>, vector<1x8x8xbf16>,
      %152 = vector.extract_strided_slice %116 {offsets = [0, 48], sizes = [8, 8], strides = [1, 1]} : vector<8x96xf32> to vector<8x8xf32>
      %153 = arith.truncf %152 : vector<8x8xf32> to vector<8x8xbf16>
      %c2_79 = arith.constant 2 : index
      %c0_80 = arith.constant 0 : index
      %c0_81 = arith.constant 0 : index
      %154 = vector.load %arg17[%c2_79, %c0_80, %c0_81] : memref<4x8x8xbf16, #tpu.memory_space<vmem>>, vector<1x8x8xbf16>
      %155 = vector.shape_cast %154 : vector<1x8x8xbf16> to vector<8x8xbf16>
      %156 = vector.shape_cast %153 : vector<8x8xbf16> to vector<1x8x8xbf16>
      tpu.vector_store %arg17[%c2_79, %c0_80, %c0_81], %156 {strides = array<i32>} : memref<4x8x8xbf16, #tpu.memory_space<vmem>>, vector<1x8x8xbf16>,
      %157 = vector.extract_strided_slice %116 {offsets = [0, 80], sizes = [8, 8], strides = [1, 1]} : vector<8x96xf32> to vector<8x8xf32>
      %158 = arith.truncf %157 : vector<8x8xf32> to vector<8x8xbf16>
      %c2_82 = arith.constant 2 : index
      %c0_83 = arith.constant 0 : index
      %c0_84 = arith.constant 0 : index
      %159 = vector.load %arg18[%c2_82, %c0_83, %c0_84] : memref<4x8x8xbf16, #tpu.memory_space<vmem>>, vector<1x8x8xbf16>
      %160 = vector.shape_cast %159 : vector<1x8x8xbf16> to vector<8x8xbf16>
      %161 = vector.shape_cast %158 : vector<8x8xbf16> to vector<1x8x8xbf16>
      tpu.vector_store %arg18[%c2_82, %c0_83, %c0_84], %161 {strides = array<i32>} : memref<4x8x8xbf16, #tpu.memory_space<vmem>>, vector<1x8x8xbf16>,
      %162 = vector.extract_strided_slice %116 {offsets = [0, 24], sizes = [8, 8], strides = [1, 1]} : vector<8x96xf32> to vector<8x8xf32>
      %163 = arith.truncf %162 : vector<8x8xf32> to vector<8x8xbf16>
      %c3 = arith.constant 3 : index
      %c0_85 = arith.constant 0 : index
      %c0_86 = arith.constant 0 : index
      %164 = vector.load %arg16[%c3, %c0_85, %c0_86] : memref<4x8x8xbf16, #tpu.memory_space<vmem>>, vector<1x8x8xbf16>
      %165 = vector.shape_cast %164 : vector<1x8x8xbf16> to vector<8x8xbf16>
      %166 = vector.shape_cast %163 : vector<8x8xbf16> to vector<1x8x8xbf16>
      tpu.vector_store %arg16[%c3, %c0_85, %c0_86], %166 {strides = array<i32>} : memref<4x8x8xbf16, #tpu.memory_space<vmem>>, vector<1x8x8xbf16>,
      %167 = vector.extract_strided_slice %116 {offsets = [0, 56], sizes = [8, 8], strides = [1, 1]} : vector<8x96xf32> to vector<8x8xf32>
      %168 = arith.truncf %167 : vector<8x8xf32> to vector<8x8xbf16>
      %c3_87 = arith.constant 3 : index
      %c0_88 = arith.constant 0 : index
      %c0_89 = arith.constant 0 : index
      %169 = vector.load %arg17[%c3_87, %c0_88, %c0_89] : memref<4x8x8xbf16, #tpu.memory_space<vmem>>, vector<1x8x8xbf16>
      %170 = vector.shape_cast %169 : vector<1x8x8xbf16> to vector<8x8xbf16>
      %171 = vector.shape_cast %168 : vector<8x8xbf16> to vector<1x8x8xbf16>
      tpu.vector_store %arg17[%c3_87, %c0_88, %c0_89], %171 {strides = array<i32>} : memref<4x8x8xbf16, #tpu.memory_space<vmem>>, vector<1x8x8xbf16>,
      %172 = vector.extract_strided_slice %116 {offsets = [0, 88], sizes = [8, 8], strides = [1, 1]} : vector<8x96xf32> to vector<8x8xf32>
      %173 = arith.truncf %172 : vector<8x8xf32> to vector<8x8xbf16>
      %c3_90 = arith.constant 3 : index
      %c0_91 = arith.constant 0 : index
      %c0_92 = arith.constant 0 : index
      %174 = vector.load %arg18[%c3_90, %c0_91, %c0_92] : memref<4x8x8xbf16, #tpu.memory_space<vmem>>, vector<1x8x8xbf16>
      %175 = vector.shape_cast %174 : vector<1x8x8xbf16> to vector<8x8xbf16>
      %176 = vector.shape_cast %173 : vector<8x8xbf16> to vector<1x8x8xbf16>
      tpu.vector_store %arg18[%c3_90, %c0_91, %c0_92], %176 {strides = array<i32>} : memref<4x8x8xbf16, #tpu.memory_space<vmem>>, vector<1x8x8xbf16>,
    } else {
    }
    %c8_i32 = arith.constant 8 : i32
    %3 = arith.muli %arg1, %c8_i32 : i32
    %4 = tpu.assume_multiple %3, 8 : i32
    %c0 = arith.constant 0 : index
    %5 = arith.index_cast %4 : i32 to index
    %c0_1 = arith.constant 0 : index
    %6 = vector.load %arg16[%c0, %5, %c0_1] : memref<4x8x8xbf16, #tpu.memory_space<vmem>>, vector<4x8x8xbf16>
    %c0_2 = arith.constant 0 : index
    %c0_3 = arith.constant 0 : index
    %c0_4 = arith.constant 0 : index
    %7 = vector.load %arg17[%c0_2, %c0_3, %c0_4] : memref<4x8x8xbf16, #tpu.memory_space<vmem>>, vector<4x8x8xbf16>
    %c0_5 = arith.constant 0 : index
    %c0_6 = arith.constant 0 : index
    %c0_7 = arith.constant 0 : index
    %8 = vector.load %arg18[%c0_5, %c0_6, %c0_7] : memref<4x8x8xbf16, #tpu.memory_space<vmem>>, vector<4x8x8xbf16>
    "tpu.trace_start"() <{level = 10 : i32, message = "hqd,hkd->hqk"}> : () -> ()
    %cst = arith.constant dense<0.000000e+00> : vector<4x8x8xf32>
    %9 = tpu.matmul %6, %7, %cst {dimension_numbers = #tpu.dot_dimension_numbers<[2], [2], [1], [1], [0, 0, 0, 1, 1, 1], [0], [0]>} : vector<4x8x8xbf16>, vector<4x8x8xbf16>, vector<4x8x8xf32> -> vector<4x8x8xf32>
    "tpu.trace_stop"() : () -> ()
    %cst_8 = arith.constant dense<0xFF800000> : vector<4x8xf32>
    %10 = vector.multi_reduction <maximumf>, %9, %cst_8 [2] : vector<4x8x8xf32> to vector<4x8xf32>
    %11 = vector.shape_cast %10 : vector<4x8xf32> to vector<4x8x1xf32>
    %12 = vector.broadcast %11 : vector<4x8x1xf32> to vector<4x8x8xf32>
    %13 = arith.subf %9, %12 : vector<4x8x8xf32>
    %14 = math.exp %13 : vector<4x8x8xf32>
    %cst_9 = arith.constant dense<0.000000e+00> : vector<4x8xf32>
    %15 = vector.multi_reduction <add>, %14, %cst_9 [2] : vector<4x8x8xf32> to vector<4x8xf32>
    %16 = vector.shape_cast %15 : vector<4x8xf32> to vector<4x8x1xf32>
    %17 = tpu.reciprocal %16 {approx = true} : vector<4x8x1xf32> -> vector<4x8x1xf32>
    %18 = vector.broadcast %17 : vector<4x8x1xf32> to vector<4x8x8xf32>
    %19 = arith.mulf %14, %18 : vector<4x8x8xf32>
    %20 = arith.truncf %19 : vector<4x8x8xf32> to vector<4x8x8xbf16>
    "tpu.trace_start"() <{level = 10 : i32, message = "hqk,hkd->hqd"}> : () -> ()
    %cst_10 = arith.constant dense<0.000000e+00> : vector<4x8x8xf32>
    %21 = tpu.matmul %20, %8, %cst_10 {dimension_numbers = #tpu.dot_dimension_numbers<[2], [1], [1], [2], [0, 0, 0, 1, 1, 2], [0], [0]>} : vector<4x8x8xbf16>, vector<4x8x8xbf16>, vector<4x8x8xf32> -> vector<4x8x8xf32>
    "tpu.trace_stop"() : () -> ()
    %22 = vector.extract_strided_slice %21 {offsets = [0, 0, 0], sizes = [1, 8, 8], strides = [1, 1, 1]} : vector<4x8x8xf32> to vector<1x8x8xf32>
    %23 = vector.shape_cast %22 : vector<1x8x8xf32> to vector<8x8xf32>
    %24 = vector.extract_strided_slice %21 {offsets = [1, 0, 0], sizes = [1, 8, 8], strides = [1, 1, 1]} : vector<4x8x8xf32> to vector<1x8x8xf32>
    %25 = vector.shape_cast %24 : vector<1x8x8xf32> to vector<8x8xf32>
    %26 = vector.extract_strided_slice %21 {offsets = [2, 0, 0], sizes = [1, 8, 8], strides = [1, 1, 1]} : vector<4x8x8xf32> to vector<1x8x8xf32>
    %27 = vector.shape_cast %26 : vector<1x8x8xf32> to vector<8x8xf32>
    %28 = vector.extract_strided_slice %21 {offsets = [3, 0, 0], sizes = [1, 8, 8], strides = [1, 1, 1]} : vector<4x8x8xf32> to vector<1x8x8xf32>
    %29 = vector.shape_cast %28 : vector<1x8x8xf32> to vector<8x8xf32>
    %30 = tpu.concatenate %23, %25, %27, %29 in 1 : vector<8x8xf32>, vector<8x8xf32>, vector<8x8xf32>, vector<8x8xf32> -> vector<8x32xf32>
    %31 = arith.truncf %30 : vector<8x32xf32> to vector<8x32xbf16>
    %c0_11 = arith.constant 0 : index
    %c0_12 = arith.constant 0 : index
    %32 = vector.load %arg7[%c0_11, %c0_12] : memref<32x32xbf16, #tpu.memory_space<vmem>>, vector<32x32xbf16>
    %cst_13 = arith.constant dense<0.000000e+00> : vector<8x32xf32>
    %33 = tpu.matmul %31, %32, %cst_13 {dimension_numbers = #tpu.dot_dimension_numbers<[1], [0], [0], [1], [0, 0, 1, 1], [], []>} : vector<8x32xbf16>, vector<32x32xbf16>, vector<8x32xf32> -> vector<8x32xf32>
    %c0_14 = arith.constant 0 : index
    %c0_15 = arith.constant 0 : index
    %34 = vector.load %arg8[%c0_14, %c0_15] : memref<1x32xf32, #tpu.memory_space<vmem>>, vector<1x32xf32>
    %35 = vector.broadcast %34 : vector<1x32xf32> to vector<8x32xf32>
    %36 = arith.addf %33, %35 : vector<8x32xf32>
    %c0_16 = arith.constant 0 : index
    %37 = arith.index_cast %4 : i32 to index
    %c0_17 = arith.constant 0 : index
    %38 = vector.load %arg2[%c0_16, %37, %c0_17] : memref<1x8x32xf32, #tpu.memory_space<vmem>>, vector<1x8x32xf32>
    %39 = vector.shape_cast %38 : vector<1x8x32xf32> to vector<8x32xf32>
    %40 = arith.addf %39, %36 : vector<8x32xf32>
    %c0_18 = arith.constant 0 : index
    %c0_19 = arith.constant 0 : index
    %41 = vector.load %arg9[%c0_18, %c0_19] : memref<1x32xf32, #tpu.memory_space<vmem>>, vector<1x32xf32>
    %c0_20 = arith.constant 0 : index
    %c0_21 = arith.constant 0 : index
    %42 = vector.load %arg10[%c0_20, %c0_21] : memref<1x32xf32, #tpu.memory_space<vmem>>, vector<1x32xf32>
    %cst_22 = arith.constant dense<0.000000e+00> : vector<8xf32>
    %43 = vector.multi_reduction <add>, %40, %cst_22 [1] : vector<8x32xf32> to vector<8xf32>
    %44 = vector.shape_cast %43 : vector<8xf32> to vector<8x1xf32>
    %cst_23 = arith.constant 3.200000e+01 : f32
    %45 = vector.broadcast %cst_23 : f32 to vector<8x1xf32>
    %46 = arith.divf %44, %45 : vector<8x1xf32>
    %47 = vector.broadcast %46 : vector<8x1xf32> to vector<8x32xf32>
    %48 = arith.subf %40, %47 : vector<8x32xf32>
    %49 = arith.mulf %48, %48 : vector<8x32xf32>
    %cst_24 = arith.constant dense<0.000000e+00> : vector<8xf32>
    %50 = vector.multi_reduction <add>, %49, %cst_24 [1] : vector<8x32xf32> to vector<8xf32>
    %51 = vector.shape_cast %50 : vector<8xf32> to vector<8x1xf32>
    %cst_25 = arith.constant 3.200000e+01 : f32
    %52 = vector.broadcast %cst_25 : f32 to vector<8x1xf32>
    %53 = arith.divf %51, %52 : vector<8x1xf32>
    %cst_26 = arith.constant 9.99999974E-6 : f32
    %54 = vector.broadcast %cst_26 : f32 to vector<8x1xf32>
    %55 = arith.addf %53, %54 : vector<8x1xf32>
    %56 = math.rsqrt %55 : vector<8x1xf32>
    %57 = vector.broadcast %56 : vector<8x1xf32> to vector<8x32xf32>
    %58 = arith.mulf %48, %57 : vector<8x32xf32>
    %59 = vector.broadcast %41 : vector<1x32xf32> to vector<8x32xf32>
    %60 = arith.mulf %58, %59 : vector<8x32xf32>
    %61 = vector.broadcast %42 : vector<1x32xf32> to vector<8x32xf32>
    %62 = arith.addf %60, %61 : vector<8x32xf32>
    %63 = arith.truncf %62 : vector<8x32xf32> to vector<8x32xbf16>
    %c0_27 = arith.constant 0 : index
    %c0_28 = arith.constant 0 : index
    %64 = vector.load %arg11[%c0_27, %c0_28] : memref<32x64xbf16, #tpu.memory_space<vmem>>, vector<32x64xbf16>
    %cst_29 = arith.constant dense<0.000000e+00> : vector<8x64xf32>
    %65 = tpu.matmul %63, %64, %cst_29 {dimension_numbers = #tpu.dot_dimension_numbers<[1], [0], [0], [1], [0, 0, 1, 1], [], []>} : vector<8x32xbf16>, vector<32x64xbf16>, vector<8x64xf32> -> vector<8x64xf32>
    %c0_30 = arith.constant 0 : index
    %c0_31 = arith.constant 0 : index
    %66 = vector.load %arg12[%c0_30, %c0_31] : memref<1x64xf32, #tpu.memory_space<vmem>>, vector<1x64xf32>
    %67 = vector.broadcast %66 : vector<1x64xf32> to vector<8x64xf32>
    %68 = arith.addf %65, %67 : vector<8x64xf32>
    %cst_32 = arith.constant 5.000000e-01 : f32
    %69 = vector.broadcast %cst_32 : f32 to vector<8x64xf32>
    %70 = arith.mulf %69, %68 : vector<8x64xf32>
    %cst_33 = arith.constant 0.707106769 : f32
    %71 = vector.broadcast %cst_33 : f32 to vector<8x64xf32>
    %72 = arith.mulf %68, %71 : vector<8x64xf32>
    %73 = math.erf %72 : vector<8x64xf32>
    %cst_34 = arith.constant 1.000000e+00 : f32
    %74 = vector.broadcast %cst_34 : f32 to vector<8x64xf32>
    %75 = arith.addf %74, %73 : vector<8x64xf32>
    %76 = arith.mulf %70, %75 : vector<8x64xf32>
    %77 = arith.truncf %76 : vector<8x64xf32> to vector<8x64xbf16>
    %c0_35 = arith.constant 0 : index
    %c0_36 = arith.constant 0 : index
    %78 = vector.load %arg13[%c0_35, %c0_36] : memref<64x32xbf16, #tpu.memory_space<vmem>>, vector<64x32xbf16>
    %cst_37 = arith.constant dense<0.000000e+00> : vector<8x32xf32>
    %79 = tpu.matmul %77, %78, %cst_37 {dimension_numbers = #tpu.dot_dimension_numbers<[1], [0], [0], [1], [0, 0, 1, 1], [], []>} : vector<8x64xbf16>, vector<64x32xbf16>, vector<8x32xf32> -> vector<8x32xf32>
    %c0_38 = arith.constant 0 : index
    %c0_39 = arith.constant 0 : index
    %80 = vector.load %arg14[%c0_38, %c0_39] : memref<1x32xf32, #tpu.memory_space<vmem>>, vector<1x32xf32>
    %81 = vector.broadcast %80 : vector<1x32xf32> to vector<8x32xf32>
    %82 = arith.addf %79, %81 : vector<8x32xf32>
    %83 = arith.addf %40, %82 : vector<8x32xf32>
    %c0_40 = arith.constant 0 : index
    %c0_41 = arith.constant 0 : index
    %c0_42 = arith.constant 0 : index
    %84 = vector.load %arg15[%c0_40, %c0_41, %c0_42] : memref<1x8x32xf32, #tpu.memory_space<vmem>>, vector<1x8x32xf32>
    %85 = vector.shape_cast %84 : vector<1x8x32xf32> to vector<8x32xf32>
    %86 = vector.shape_cast %83 : vector<8x32xf32> to vector<1x8x32xf32>
    tpu.vector_store %arg15[%c0_40, %c0_41, %c0_42], %86 {strides = array<i32>} : memref<1x8x32xf32, #tpu.memory_space<vmem>>, vector<1x8x32xf32>,
    return
  }
  func.func @transform_0(%arg0: i32, %arg1: i32) -> (i32, i32, i32) {
    %c0_i32 = arith.constant 0 : i32
    %c0_i32_0 = arith.constant 0 : i32
    %c0_i32_1 = arith.constant 0 : i32
    return %arg0, %c0_i32, %c0_i32_0 : i32, i32, i32
  }
  func.func @transform_1(%arg0: i32, %arg1: i32) -> (i32, i32) {
    %c0_i32 = arith.constant 0 : i32
    %c0_i32_0 = arith.constant 0 : i32
    %c0_i32_1 = arith.constant 0 : i32
    return %c0_i32, %c0_i32_0 : i32, i32
  }
  func.func @transform_2(%arg0: i32, %arg1: i32) -> (i32, i32) {
    %c0_i32 = arith.constant 0 : i32
    %c0_i32_0 = arith.constant 0 : i32
    %c0_i32_1 = arith.constant 0 : i32
    return %c0_i32, %c0_i32_0 : i32, i32
  }
  func.func @transform_3(%arg0: i32, %arg1: i32) -> (i32, i32) {
    %c0_i32 = arith.constant 0 : i32
    %c0_i32_0 = arith.constant 0 : i32
    %c0_i32_1 = arith.constant 0 : i32
    return %c0_i32, %c0_i32_0 : i32, i32
  }
  func.func @transform_4(%arg0: i32, %arg1: i32) -> (i32, i32) {
    %c0_i32 = arith.constant 0 : i32
    %c0_i32_0 = arith.constant 0 : i32
    %c0_i32_1 = arith.constant 0 : i32
    return %c0_i32, %c0_i32_0 : i32, i32
  }
  func.func @transform_5(%arg0: i32, %arg1: i32) -> (i32, i32) {
    %c0_i32 = arith.constant 0 : i32
    %c0_i32_0 = arith.constant 0 : i32
    %c0_i32_1 = arith.constant 0 : i32
    return %c0_i32, %c0_i32_0 : i32, i32
  }
  func.func @transform_6(%arg0: i32, %arg1: i32) -> (i32, i32) {
    %c0_i32 = arith.constant 0 : i32
    %c0_i32_0 = arith.constant 0 : i32
    %c0_i32_1 = arith.constant 0 : i32
    return %c0_i32, %c0_i32_0 : i32, i32
  }
  func.func @transform_7(%arg0: i32, %arg1: i32) -> (i32, i32) {
    %c0_i32 = arith.constant 0 : i32
    %c0_i32_0 = arith.constant 0 : i32
    %c0_i32_1 = arith.constant 0 : i32
    return %c0_i32, %c0_i32_0 : i32, i32
  }
  func.func @transform_8(%arg0: i32, %arg1: i32) -> (i32, i32) {
    %c0_i32 = arith.constant 0 : i32
    %c0_i32_0 = arith.constant 0 : i32
    %c0_i32_1 = arith.constant 0 : i32
    return %c0_i32, %c0_i32_0 : i32, i32
  }
  func.func @transform_9(%arg0: i32, %arg1: i32) -> (i32, i32) {
    %c0_i32 = arith.constant 0 : i32
    %c0_i32_0 = arith.constant 0 : i32
    %c0_i32_1 = arith.constant 0 : i32
    return %c0_i32, %c0_i32_0 : i32, i32
  }
  func.func @transform_10(%arg0: i32, %arg1: i32) -> (i32, i32) {
    %c0_i32 = arith.constant 0 : i32
    %c0_i32_0 = arith.constant 0 : i32
    %c0_i32_1 = arith.constant 0 : i32
    return %c0_i32, %c0_i32_0 : i32, i32
  }
  func.func @transform_11(%arg0: i32, %arg1: i32) -> (i32, i32) {
    %c0_i32 = arith.constant 0 : i32
    %c0_i32_0 = arith.constant 0 : i32
    %c0_i32_1 = arith.constant 0 : i32
    return %c0_i32, %c0_i32_0 : i32, i32
  }
  func.func @transform_12(%arg0: i32, %arg1: i32) -> (i32, i32) {
    %c0_i32 = arith.constant 0 : i32
    %c0_i32_0 = arith.constant 0 : i32
    %c0_i32_1 = arith.constant 0 : i32
    return %c0_i32, %c0_i32_0 : i32, i32
  }
  func.func @transform_13(%arg0: i32, %arg1: i32) -> (i32, i32, i32) {
    %c0_i32 = arith.constant 0 : i32
    %c0_i32_0 = arith.constant 0 : i32
    return %arg0, %arg1, %c0_i32 : i32, i32, i32
  }
}

</mosaic_0001>

<bundles_post_ra>
// kernel: tpu_custom_call.1
= control target key start
LH: loop header
LB: loop body
LE: loop exit
PB: predicated region body
PF: predicated region fallthrough
CT: control target
= control target key end

     0   :  { %s2428_s0 = inlined_call_operand.vmem [shape: f32[2,8,32], index: 0, kind: input, shape index: {}]   ;;  %s2429_s1 = inlined_call_operand.vmem [shape: f32[1,32], index: 1, kind: input, shape index: {}]   ;;  %s2430_s2 = inlined_call_operand.vmem [shape: f32[1,32], index: 2, kind: input, shape index: {}]   ;;  %s2431_s3 = inlined_call_operand.vmem [shape: bf16[32,96], index: 3, kind: input, shape index: {}]   ;;  %s2432_s4 = inlined_call_operand.vmem [shape: f32[1,96], index: 4, kind: input, shape index: {}]   ;;  %s2433_s5 = inlined_call_operand.vmem [shape: bf16[32,32], index: 5, kind: input, shape index: {}]   ;;  %s2434_s6 = inlined_call_operand.vmem [shape: f32[1,32], index: 6, kind: input, shape index: {}]   ;;  %s2435_s7 = inlined_call_operand.hbm [shape: f32[1,32], index: 7, kind: input, shape index: {}]   ;;  %s2436_s8 = inlined_call_operand.hbm [shape: f32[1,32], index: 8, kind: input, shape index: {}]   ;;  %s2437_s9 = inlined_call_operand.hbm [shape: bf16[32,64], index: 9, kind: input, shape index: {}]   ;;  %s2438_s10 = inlined_call_operand.hbm [shape: f32[1,64], index: 10, kind: input, shape index: {}]   ;;  %s2439_s11 = inlined_call_operand.vmem [shape: bf16[64,32], index: 11, kind: input, shape index: {}]   ;;  %s2440_s12 = inlined_call_operand.vmem [shape: f32[1,32], index: 12, kind: input, shape index: {}]   ;;  %s2441_s13 = inlined_call_operand.hbm [shape: f32[2,8,32], index: 13, kind: output, shape index: {}]  }
   0x1   :  { %2448 = sst [smem:[#allocation22_spill]] %s2435_s7 }
   0x2   :  { %2449 = sst [smem:[#allocation23_spill]] %s2436_s8 }
   0x3   :  { %18 = vsyncpa [#allocation6], 0 }
   0x4   :  { %19 = vsyncpa [#allocation9], 0 }
   0x5   :  { %20 = vsyncpa [#allocation12], 0 }
   0x6   :  { %21 = vsyncpa [#allocation7], 0 }
   0x7   :  { %23 = vsyncpa [#allocation7 + $0x1], 0  ;;  %s2103_s25 = smov 0   ;;  %s2105_s26 = smov 0  }
   0x8   :  { %s2107_s27 = smov 0   ;;  %s2109_s28 = smov 0  }
   0x9   :  { %s2111_s29 = smov 0   ;;  %s2113_s30 = smov 0  }
   0xa LB: > { %2450 = sst [smem:[#allocation18_spill]] %s1996_s27  ;;  %s1505_s14 = sadd.s32 4294967295, %s2008_s30   ;;  %s2008_s30 = sphi %s2113_s30, %s29_s30   ;;  %s2004_s29 = sphi %s2111_s29, %s2467_s29   ;;  %s2000_s28 = sphi %s2109_s28, %s2466_s28   ;;  %s1996_s27 = sphi %s2107_s27, %s2465_s27   ;;  %s1992_s26 = sphi %s2105_s26, %s2469_s26   ;;  %s1988_s25 = sphi %s2103_s25, %s2468_s25  }
   0xb   : > { %2451 = sst [smem:[#allocation19_spill]] %s2004_s29  ;;  %s1506_s15 = sadd.s32 4294967294, %s2008_s30  }
   0xc   : > { %s41_s16 = sadd.s32 1, %s2004_s29  ;;  %s328_s17 = sadd.s32 1, %s1996_s27 }
   0xd   : > { %p43_p0 = scmp.ge.s32.totalorder %s41_s16, 2  ;;  %p338_p1 = scmp.ne.s32.totalorder %s1996_s27, %s1992_s26 }
   0xe   : > { %p339_p2 = scmp.eq.s32.totalorder %s1505_s14, 1  ;;  %p344_p3 = scmp.ne.s32.totalorder %s1992_s26, %s1988_s25 }
   0xf   : > { %s2471_s16 = smov (%p43_p0, %s41_s16), 0  ;;  %p345_p5 = scmp.eq.s32.totalorder %s1506_s15, 1 }
  0x10   : > { %2452 = sst [smem:[#allocation20_spill]] %s2471_s16  ;;  %p2143_p4 = por %p339_p2, %p338_p1 }
  0x11   : > { %s323_s19 = ssub.s32 %s2004_s29, %s2471_s16  ;;  %p1507_p6 = scmp.ge.s32.totalorder %s2008_s30, 1 }
  0x12   : > { %s2453_s18 = scalar_select %p2143_p4, 1, 0 }
  0x13   : > { %p326_p7 = scmp.eq.s32.totalorder %s323_s19, 0  ;;  %p2150_p8 = por %p345_p5, %p344_p3 }
  0x14   : > { %p352_p9 = scmp.lt.s32.totalorder %s2008_s30, 3  ;;  %p2162_p11 = scmp.eq.s32.totalorder %s1505_s14, 0 }
  0x15   : > { %s2454_s20 = scalar_select %p2150_p8, 1, 0 }
  0x16   : > { %s2156_s21 = scalar_select %p326_p7, %s1996_s27, %s328_s17  }
  0x17   : > { %p2158_p10 = pnand %p1507_p6, %p352_p9  ;;  %s2010_s24 = smov [#allocation8]  }
  0x18   : > { %2455 = sst [smem:[#allocation21_spill]] %s2156_s21  ;;  %s394_s15 = sshll.u32 %s2010_s24, 4  ;;  %s395_s15 = int_to_ptr.vmem [resolvable:$true] %s394_s15 }
  0x19   : > { %s2457_s23 = scalar_select %p2162_p11, 1, 0 }
  0x1a   : > { %p1688_p12 = pneg %p2158_p10  ;;  %s2011_s17 = smov [#allocation5]  }
  0x1b   : > { %s383_s16 = sshll.u32 %s2011_s17, 4  ;;  %s1827_s14 = scalar_lea.vmem %s395_s15, 16  ;;  %s384_s16 = int_to_ptr.vmem [resolvable:$true] %s383_s16 }
  0x1c   : > { %p2170_p13 = pnand %p2162_p11, %p1688_p12  ;;  %p1828_p1 = scmp.ne.s32.totalorder %s395_s15, %s1827_s14 }
  0x1d   : > { %s1834_s24 = scalar_lea.vmem %s395_s15, 32  ;;  %p1835_p5 = scmp.lt.s32.totalorder %s395_s15, %s395_s15 }
  0x1e   : > { %p1818_p0 = pneg %p2170_p13  ;;  %p1836_p6 = scmp.lt.s32.totalorder %s1834_s24, %s1827_s14 }
  0x20   : > { %p1830_p2 = pnand %p1828_p1, %p1818_p0  ;;  %p1837_p7 = por %p1836_p6, %p1835_p5 }
  0x22   : > { %p1831_p3 = pneg %p1830_p2 }
  0x24   : > { %p1838_p9 = pnand %p1837_p7, %p1831_p3 }
  0x26   : > { %1841 = shalt.err (!%p1838_p9)
}
  0x27   : > { %s2459_s8 = sld [smem:[#allocation23_spill]]  ;;  %s1853_s17 = scalar_lea.vmem %s384_s16, 16 }
  0x28   : > { %p1854_p12 = scmp.ne.s32.totalorder %s384_s16, %s1853_s17  ;;  %s1860_s27 = scalar_lea.vmem %s384_s16, 32 }
  0x29   : > { %p1861_p2 = scmp.lt.s32.totalorder %s384_s16, %s384_s16  ;;  %p1862_p4 = scmp.lt.s32.totalorder %s1860_s27, %s1853_s17 }
  0x2a   : > { %p1856_p8 = pnand %p1854_p12, %p1818_p0 }
  0x2b   : > { %p1863_p11 = por %p1862_p4, %p1861_p2 }
  0x2c   : > { %p1857_p1 = pneg %p1856_p8 }
  0x2d   : > { %1694 = dma.hbm_to_vmem [thread:$0]  (!%p2170_p13), %s2459_s8, 16, %s395_s15, [#allocation9]  }
  0x2e   : > { %p1864_p5 = pnand %p1863_p11, %p1857_p1 }
  0x30   : > { %1867 = shalt.err (!%p1864_p5)
}
  0x31   : > { %s2460_s7 = sld [smem:[#allocation22_spill]]  ;;  %s2012_s29 = smov [#allocation10]  }
  0x32   : > { %s404_s21 = sshll.u32 %s2012_s29, 4  ;;  %s405_s21 = int_to_ptr.vmem [resolvable:$true] %s404_s21 }
  0x33   : > { %s1879_s15 = scalar_lea.vmem %s405_s21, 256  ;;  %p1887_p7 = scmp.lt.s32.totalorder %s405_s21, %s405_s21 }
  0x34   : > { %p1880_p3 = scmp.ne.s32.totalorder %s405_s21, %s1879_s15  ;;  %p1888_p4 = scmp.lt.s32.totalorder %s1879_s15, %s1879_s15 }
  0x36   : > { %p1882_p8 = pnand %p1880_p3, %p1818_p0  ;;  %p1889_p11 = por %p1888_p4, %p1887_p7 }
  0x37   : > { %1691 = dma.hbm_to_vmem [thread:$0]  (!%p2170_p13), %s2460_s7, 16, %s384_s16, [#allocation6]  }
  0x38   : > { %p1883_p6 = pneg %p1882_p8 }
  0x3a   : > { %p1890_p9 = pnand %p1889_p11, %p1883_p6 }
  0x3c   : > { %1893 = shalt.err (!%p1890_p9)
}
  0x3d   : > { %s2013_s27 = smov 64   ;;  %s2014_s17 = smov 4  }
  0x3e   : > { %1697 = dma.hbm_to_vmem [thread:$0]  (!%p2170_p13), %s2437_s9, 256, %s405_s21, [#allocation9], %s2013_s27, %s2013_s27, %s2014_s17  }
  0x3f   : > { %s2015_s24 = smov [#allocation11]  }
  0x40   : > { %s418_s29 = sshll.u32 %s2015_s24, 4  ;;  %s419_s29 = int_to_ptr.vmem [resolvable:$true] %s418_s29 }
  0x41   : > { %s1905_s7 = scalar_lea.vmem %s419_s29, 16  ;;  %s1912_s15 = scalar_lea.vmem %s419_s29, 32 }
  0x42   : > { %p1906_p12 = scmp.ne.s32.totalorder %s419_s29, %s1905_s7  ;;  %p1913_p5 = scmp.lt.s32.totalorder %s419_s29, %s419_s29 }
  0x43   : > { %p1914_p3 = scmp.lt.s32.totalorder %s1912_s15, %s1905_s7 }
  0x44   : > { %p1908_p1 = pnand %p1906_p12, %p1818_p0 }
  0x45   : > { %p1915_p8 = por %p1914_p3, %p1913_p5 }
  0x46   : > { %p1909_p2 = pneg %p1908_p1 }
  0x48   : > { %p1916_p6 = pnand %p1915_p8, %p1909_p2 }
  0x4a   : > { %1919 = shalt.err (!%p1916_p6)
}
  0x4b   : > { %1700 = dma.hbm_to_vmem [thread:$0]  (!%p2170_p13), %s2438_s10, 16, %s419_s29, [#allocation12]  }
  0x4c   : > { %444 = sbr.rel (%p2158_p10) target bundleno = 2502 (0x9c6), region = 72  ;;  %p2461_p7 = scmp.ne.s32.totalorder (!%p2158_p10), %s2457_s23, 0 }
  0x51   : > { %1971 = dma.done.wait (%p2461_p7), [#allocation6], 16  }
  0x52   : > { %1973 = vsyncadd (%p2461_p7), [#allocation6], 4294967280 }
  0x53   : > { %1975 = dma.done.wait (%p2461_p7), [#allocation9], 272  }
  0x54   : > { %1977 = vsyncadd (%p2461_p7), [#allocation9], 4294967024 }
  0x55   : > { %1979 = dma.done.wait (%p2461_p7), [#allocation12], 16  }
  0x56   : > { %1981 = vsyncadd (%p2461_p7), [#allocation12], 4294967280  ;;  %p499_p10 = scmp.lt.s32.totalorder %s2000_s28, 1  ;;  %vm511_vm0 = vcmask 261120   ;;  %v1784_v7 = vld [vmem:[%s2431_s3 + $0x8] sm:$0xff]   ;;  %v2016_v8 = vmov 0.0  }
  0x57   : > { %1586 = vmatprep.subr.bf16.mxu0 %v2016_v8  ;;  %vm2017_vm1 = vmmov 0   ;;  %v1785_v9 = vld [vmem:[%s2431_s3] sm:$0xff]   ;;  %1594 = vmatprep.subr.bf16.mxu1 %v2016_v8  ;;  %vm608_vm2 = vcmask 60416   ;;  %s2018_s22 = smov 80   ;;  %s2019_s19 = smov 96   ;;  %vm683_vm3 = vcmask 64512  }
  0x58   : > { %s500_s7 = scalar_select %p499_p10, %s2000_s28, 1  ;;  %1590 = vmatprep.mubr.msk.bf16.mxu0 %vm2017_vm1, %v2016_v8  ;;  %1587 = vmatpush3.bf16.msra.mxu0 %v1784_v7  ;;  %v1520_v14 = vld [vmem:[%s2429_s1] ss:$0 sm:$0xff]  ;;  %vm919_vm4 = vcmask 1043456   ;;  %vm1114_vm5 = vcmask 130048   ;;  %vm1116_vm6 = vcmask 195584  }
  0x59   : > { %1588 = vmatprep.subr.bf16.mxu0 %v2016_v8  ;;  %1596 = vmatprep.mubr.msk.bf16.mxu1 %vm2017_vm1, %v2016_v8  ;;  %v1521_v16 = vld [vmem:[%s2430_s2] ss:$0 sm:$0xff]  ;;  %s2021_s23 = smov 120   ;;  %s2022_s27 = smov 72   ;;  %vm1331_vm7 = vcmask 523264  }
  0x5a   : > { %s1519_s8 = sshll.u32 %s500_s7, 3  ;;  %v1522_v20 = vld [vmem:[%s2432_s4] ss:$0 sm:$0xff]  ;;  %s2023_s17 = smov 112  }
  0x5b   : > { %s502_s21 = scalar_lea.vmem %s2428_s0, %s1519_s8  ;;  %s2024_s14 = smov 104  }
  0x5c   : > { %v2227_v0 = vld [vmem:[%s502_s21] sm:$0xff]  ;;  %1589 = vmatpush3.bf16.msra.mxu0 %v1785_v9  ;;  %s2020_s21 = smov 88   ;;  %s2025_s24 = smov 64  }
  0x5d   : > { %v512_v1 = vsel %vm511_vm0, %v2227_v0, 0.0  ;;  %1600 = vmatprep.subr.bf16.mxu0 %v2016_v8  ;;  %s2026_s29 = smov 48   ;;  %s2027_s15 = smov 40  }
  0x5e   : > { %513 = vadd.xlane.f32.xlu0 %v512_v1  ;;  %s2028_s16 = smov 56   ;;  %p2462_p0 = scmp.ne.s32.totalorder %s2453_s18, 0 }
  0xe7   : > { %v514_v2 = vpop.xlane.xlu0 %513 }
  0xe8   : > { %v516_v3 = vmul.f32 0.03125, %v514_v2 }
  0xea   : > { %v517_v4 = vsub.f32 %v2227_v0, %v516_v3 }
  0xec   : > { %v518_v5 = vmul.f32 %v517_v4, %v517_v4 }
  0xee   : > { %v519_v6 = vsel %vm511_vm0, %v518_v5, 0.0 }
  0xef   : > { %520 = vadd.xlane.f32.xlu0 %v519_v6 }
 0x178   : > { %v521_v10 = vpop.xlane.xlu0 %520 }
 0x179   : > { %v522_v11 = vmul.f32 0.03125, %v521_v10 }
 0x17b   : > { %v523_v12 = vadd.f32 1e-05, %v522_v11 }
 0x17d   : > { %1794 = vrsqrt.f32 %v523_v12 }
 0x18a   : > { %v1795_v13 = vpop.eup %1794 }
 0x18b   : > { %v525_v15 = vmul.f32 %v1795_v13, %v517_v4 }
 0x18d   : > { %v532_v17 = vmul.f32 %v1520_v14, %v525_v15 }
 0x18f   : > { %v539_v18 = vadd.f32 %v1521_v16, %v532_v17 }
 0x191   : > { %v540_v19 = vpack.c.bf16 %v539_v18, %v539_v18 }
 0x193   : > { %1591 = vmatmul.mubr.msk.bf16.vlgmr.msra.gmra.mxu0 %vm511_vm0, %v540_v19 }
 0x194   : > { %1602 = vmatprep.mubr.msk.bf16.mxu0 %vm2017_vm1, %v2016_v8 }
 0x253   : > { %v601_v21 = vpop.f32.mrf.mxu0 }
 0x254   : > { %v602_v22 = vadd.f32 %v1522_v20, %v601_v21 }
 0x255   : > { %v1592_v23 = vpop.f32.mrf.mxu0 }
 0x256   : > { %v2259_v24 = vpack.c.bf16 %v602_v22, %v602_v22 }
 0x257   : > { %v604_v25 = vpop.f32.mrf.mxu0 }
 0x258   : > { %641 = vrot.lane.b32.xlu0 %v2259_v24, %s2018_s22  ;;  %613 = vrot.lane.b32.xlu1 %v2259_v24, %s2019_s19  ;;  %609 = vst.msk [vmem:[#allocation2] sm:$0xf] %vm608_vm2, %v2259_v24  ;;  %s2032_s22 = smov [#allocation13]  }
 0x259   : > { %v1593_v26 = vpop.f32.mrf.mxu0  ;;  %s1924_s19 = sshll.u32 %s2032_s22, 4  ;;  %s1925_s19 = int_to_ptr.vmem [resolvable:$false] %s1924_s19 }
 0x25c   : > { %626 = vrot.lane.b32.xlu1 %v2259_v24, %s2020_s21  ;;  %s2029_s21 = smov 16  }
 0x25f   : > { %v671_v38 = vld [vmem:[#allocation2] sm:$0xf] }
 0x260   : > { %621 = vrot.lane.b32.xlu1 %v2259_v24, %s2021_s23  ;;  %s2030_s23 = smov 8  }
 0x264   : > { %656 = vrot.lane.b32.xlu1 %v2259_v24, %s2022_s27  ;;  %s2031_s27 = smov 24  }
 0x268   : > { %636 = vrot.lane.b32.xlu1 %v2259_v24, %s2023_s17 }
 0x26c   : > { %651 = vrot.lane.b32.xlu1 %v2259_v24, %s2024_s14  ;;  %s1552_s14 = sshll.u32 %s2000_s28, 7 }
 0x26d   : > { %s2381_s7 = scalar_lea.hbm %s2441_s13, %s1552_s14 }
 0x2ca   : > { %v642_v27 = vpop.permute.xlu0 %641  ;;  %v614_v28 = vpop.permute.xlu1 %613 }
 0x2cb   : > { %645 = vst.msk [vmem:[#allocation3 + $0x8] sm:$0xf] %vm608_vm2, %v642_v27  ;;  %616 = vst.msk [vmem:[#allocation3] sm:$0xf] %vm608_vm2, %v614_v28 }
 0x2ce   : > { %v627_v29 = vpop.permute.xlu1 %626 }
 0x2cf   : > { %630 = vst.msk [vmem:[#allocation3 + $0x4] sm:$0xf] %vm608_vm2, %v627_v29 }
 0x2d2   : > { %v622_v30 = vpop.permute.xlu1 %621  ;;  %v675_v31 = vld [vmem:[#allocation3] sm:$0xf]  ;;  %v677_v36 = vld [vmem:[#allocation3 + $0x8] sm:$0xf] }
 0x2d3   : > { %625 = vst.msk [vmem:[#allocation2 + $0x4] sm:$0xf] %vm608_vm2, %v622_v30  ;;  %v688_v32 = vsel %vm683_vm3, %v675_v31, 0  ;;  %v780_v39 = vsel %vm683_vm3, %v677_v36, 0 }
 0x2d4   : > { %1595 = vmatpush3.bf16.xpose.msra.mxu1 %v688_v32 }
 0x2d5   : > { %1606 = vmatprep.subr.bf16.mxu1 %v2016_v8 }
 0x2d6   : > { %v657_v33 = vpop.permute.xlu1 %656  ;;  %v676_v34 = vld [vmem:[#allocation3 + $0x4] sm:$0xf] }
 0x2d7   : > { %660 = vst.msk [vmem:[#allocation3 + $0xc] sm:$0xf] %vm608_vm2, %v657_v33  ;;  %v734_v35 = vsel %vm683_vm3, %v676_v34, 0 }
 0x2d8   : > { %1601 = vmatpush3.bf16.xpose.msra.mxu0 %v734_v35 }
 0x2d9   : > { %1612 = vmatprep.subr.bf16.mxu0 %v2016_v8 }
 0x2da   : > { %v637_v37 = vpop.permute.xlu1 %636  ;;  %v672_v41 = vld [vmem:[#allocation2 + $0x4] sm:$0xf] }
 0x2db   : > { %640 = vst.msk [vmem:[#allocation2 + $0x8] sm:$0xf] %vm608_vm2, %v637_v37  ;;  %1597 = vmatmul.mubr.msk.bf16.vlgmr.msra.gmra.mxu1 %vm683_vm3, %v671_v38 }
 0x2dc   : > { %1607 = vmatpush3.bf16.xpose.msra.mxu1 %v780_v39  ;;  %1608 = vmatprep.mubr.msk.bf16.mxu1 %vm2017_vm1, %v2016_v8 }
 0x2dd   : > { %1618 = vmatprep.subr.bf16.mxu1 %v2016_v8 }
 0x2de   : > { %v652_v40 = vpop.permute.xlu1 %651  ;;  %v678_v42 = vld [vmem:[#allocation3 + $0xc] sm:$0xf] }
 0x2df   : > { %655 = vst.msk [vmem:[#allocation2 + $0xc] sm:$0xf] %vm608_vm2, %v652_v40  ;;  %1603 = vmatmul.mubr.msk.bf16.vlgmr.msra.gmra.mxu0 %vm683_vm3, %v672_v41  ;;  %v826_v43 = vsel %vm683_vm3, %v678_v42, 0 }
 0x2e0   : > { %1613 = vmatpush3.bf16.xpose.msra.mxu0 %v826_v43  ;;  %1614 = vmatprep.mubr.msk.bf16.mxu0 %vm2017_vm1, %v2016_v8 }
 0x2e1   : > { %1624 = vmatprep.subr.bf16.mxu0 %v2016_v8 }
 0x2e2   : > { %v673_v44 = vld [vmem:[#allocation2 + $0x8] sm:$0xf] }
 0x2e3   : > { %1609 = vmatmul.mubr.msk.bf16.vlgmr.msra.gmra.mxu1 %vm683_vm3, %v673_v44 }
 0x2e4   : > { %1620 = vmatprep.mubr.msk.bf16.mxu1 %vm2017_vm1, %v2016_v8 }
 0x2e6   : > { %v674_v45 = vld [vmem:[#allocation2 + $0xc] sm:$0xf] }
 0x2e7   : > { %1615 = vmatmul.mubr.msk.bf16.vlgmr.msra.gmra.mxu0 %vm683_vm3, %v674_v45 }
 0x2e8   : > { %1626 = vmatprep.mubr.msk.bf16.mxu0 %vm2017_vm1, %v2016_v8 }
 0x39b   : > { %v724_v46 = vpop.f32.mrf.mxu1 }
 0x39c   : > { %v868_v47 = vsel %vm683_vm3, %v724_v46, -inf }
 0x39d   : > { %869 = vmax.xlane.f32.xlu1 %v868_v47  ;;  %v1598_v48 = vpop.f32.mrf.mxu1 }
 0x39f   : > { %v727_v49 = vpop.f32.mrf.mxu1  ;;  %v770_v50 = vpop.f32.mrf.mxu0 }
 0x3a0   : > { %v871_v51 = vsel %vm683_vm3, %v770_v50, -inf }
 0x3a1   : > { %v1599_v52 = vpop.f32.mrf.mxu1  ;;  %872 = vmax.xlane.f32.xlu0 %v871_v51  ;;  %v1604_v53 = vpop.f32.mrf.mxu0 }
 0x3a2   : > { %v1786_v52 = vld [vmem:[%s2433_s5 + $0x8] sm:$0xff]  }
 0x3a3   : > { %v773_v54 = vpop.f32.mrf.mxu0  ;;  %v816_v55 = vpop.f32.mrf.mxu1 }
 0x3a4   : > { %v874_v56 = vsel %vm683_vm3, %v816_v55, -inf }
 0x3a5   : > { %875 = vmax.xlane.f32.xlu1 %v874_v56  ;;  %v1605_v57 = vpop.f32.mrf.mxu0  ;;  %v1610_v58 = vpop.f32.mrf.mxu1  ;;  %v1787_v56 = vld [vmem:[%s2433_s5] sm:$0xff]  }
 0x3a7   : > { %v819_v59 = vpop.f32.mrf.mxu1  ;;  %v862_v60 = vpop.f32.mrf.mxu0 }
 0x3a8   : > { %v877_v61 = vsel %vm683_vm3, %v862_v60, -inf }
 0x3a9   : > { %v1611_v62 = vpop.f32.mrf.mxu1  ;;  %878 = vmax.xlane.f32.xlu0 %v877_v61  ;;  %v1616_v63 = vpop.f32.mrf.mxu0 }
 0x3ab   : > { %v865_v1 = vpop.f32.mrf.mxu0 }
 0x3ad   : > { %v1617_v2 = vpop.f32.mrf.mxu0 }
 0x3b6   : > { %617 = vrot.lane.b32.xlu1 %v2259_v24, %s2025_s24 }
 0x426   : > { %v870_v3 = vpop.xlane.xlu1 %869 }
 0x427   : > { %v880_v4 = vsub.f32 %v724_v46, %v870_v3 }
 0x429   : > { %v884_v5 = vmul.f32 1.442695, %v880_v4 }
 0x42a   : > { %v873_v6 = vpop.xlane.xlu0 %872 }
 0x42b   : > { %1796 = vpow2.f32 %v884_v5  ;;  %v881_v7 = vsub.f32 %v770_v50, %v873_v6 }
 0x42d   : > { %v886_v9 = vmul.f32 1.442695, %v881_v7 }
 0x42e   : > { %v876_v10 = vpop.xlane.xlu1 %875 }
 0x42f   : > { %1798 = vpow2.f32 %v886_v9  ;;  %v882_v11 = vsub.f32 %v816_v55, %v876_v10 }
 0x431   : > { %v888_v12 = vmul.f32 1.442695, %v882_v11 }
 0x432   : > { %v618_v13 = vpop.permute.xlu1 %617  ;;  %v879_v14 = vpop.xlane.xlu0 %878 }
 0x433   : > { %1800 = vpow2.f32 %v888_v12  ;;  %620 = vst.msk [vmem:[#allocation4] sm:$0xf] %vm608_vm2, %v618_v13  ;;  %v883_v15 = vsub.f32 %v862_v60, %v879_v14 }
 0x435   : > { %v890_v16 = vmul.f32 1.442695, %v883_v15  ;;  %v1535_v15 = vld [vmem:[%s2434_s6] ss:$0 sm:$0xff] }
 0x437   : > { %1802 = vpow2.f32 %v890_v16 }
 0x438   : > { %v1797_v17 = vpop.eup %1796 }
 0x439   : > { %v892_v18 = vsel %vm683_vm3, %v1797_v17, 0.0 }
 0x43a   : > { %893 = vadd.xlane.f32.xlu1 %v892_v18  ;;  %v679_v19 = vld [vmem:[#allocation4] sm:$0xf] }
 0x43b   : > { %v921_v20 = vsel %vm919_vm4, %v679_v19, 0 }
 0x43c   : > { %v1799_v21 = vpop.eup %1798  ;;  %1619 = vmatpush3.bf16.msra.mxu1 %v921_v20 }
 0x43d   : > { %v895_v22 = vsel %vm683_vm3, %v1799_v21, 0.0  ;;  %1630 = vmatprep.subr.bf16.mxu1 %v2016_v8 }
 0x43e   : > { %896 = vadd.xlane.f32.xlu0 %v895_v22 }
 0x440   : > { %v1801_v23 = vpop.eup %1800 }
 0x441   : > { %v898_v25 = vsel %vm683_vm3, %v1801_v23, 0.0 }
 0x442   : > { %899 = vadd.xlane.f32.xlu1 %v898_v25 }
 0x444   : > { %v1803_v26 = vpop.eup %1802 }
 0x445   : > { %v901_v27 = vsel %vm683_vm3, %v1803_v26, 0.0 }
 0x446   : > { %902 = vadd.xlane.f32.xlu0 %v901_v27 }
 0x453   : > { %646 = vrot.lane.b32.xlu1 %v2259_v24, %s2026_s29 }
 0x457   : > { %661 = vrot.lane.b32.xlu1 %v2259_v24, %s2027_s15 }
 0x45c   : > { %631 = vrot.lane.b32.xlu0 %v2259_v24, %s2028_s16 }
 0x4c3   : > { %v894_v28 = vpop.xlane.xlu1 %893 }
 0x4c4   : > { %1804 = vrcp.f32 %v894_v28 }
 0x4c7   : > { %v897_v29 = vpop.xlane.xlu0 %896 }
 0x4c8   : > { %1806 = vrcp.f32 %v897_v29  ;;  %v1788_v29 = vld [vmem:[#allocation10 + $0x8] sm:$0xff]  }
 0x4cb   : > { %v900_v30 = vpop.xlane.xlu1 %899 }
 0x4cc   : > { %1808 = vrcp.f32 %v900_v30  ;;  %v1789_v30 = vld [vmem:[#allocation10] sm:$0xff]  }
 0x4cf   : > { %v647_v31 = vpop.permute.xlu1 %646  ;;  %v903_v32 = vpop.xlane.xlu0 %902 }
 0x4d0   : > { %650 = vst.msk [vmem:[#allocation4 + $0x8] sm:$0xf] %vm608_vm2, %v647_v31  ;;  %1810 = vrcp.f32 %v903_v32 }
 0x4d1   : > { %v1805_v33 = vpop.eup %1804 }
 0x4d2   : > { %v908_v34 = vmul.f32 %v1805_v33, %v1797_v17 }
 0x4d3   : > { %v662_v35 = vpop.permute.xlu1 %661  ;;  %v632_v36 = vpop.permute.xlu0 %631 }
 0x4d4   : > { %665 = vst.msk [vmem:[#allocation4 + $0xc] sm:$0xf] %vm608_vm2, %v662_v35  ;;  %635 = vst.msk [vmem:[#allocation4 + $0x4] sm:$0xf] %vm608_vm2, %v632_v36  ;;  %v912_v24 = vpack.c.bf16 %v908_v34, %v908_v34  ;;  %v1539_v34 = vld [vmem:[#allocation5] ss:$0 sm:$0xff] }
 0x4d5   : > { %v1807_v37 = vpop.eup %1806  ;;  %v1540_v36 = vld [vmem:[#allocation8] ss:$0 sm:$0xff] }
 0x4d6   : > { %1621 = vmatmul.mubr.msk.bf16.vlgmr.msra.gmra.mxu1 %vm683_vm3, %v912_v24  ;;  %v909_v42 = vmul.f32 %v1807_v37, %v1799_v21 }
 0x4d7   : > { %v681_v38 = vld [vmem:[#allocation4 + $0x8] sm:$0xf]  ;;  %1632 = vmatprep.mubr.msk.bf16.mxu1 %vm2017_vm1, %v2016_v8 }
 0x4d8   : > { %v1013_v39 = vsel %vm919_vm4, %v681_v38, 0  ;;  %v913_v47 = vpack.c.bf16 %v909_v42, %v909_v42  ;;  %v1793_v42 = vld [vmem:[%s2439_s11] sm:$0xff]  }
 0x4d9   : > { %v1809_v40 = vpop.eup %1808  ;;  %1631 = vmatpush3.bf16.msra.mxu1 %v1013_v39  ;;  %v1790_v39 = vld [vmem:[%s2439_s11 + $0x18] sm:$0xff]  }
 0x4da   : > { %v910_v41 = vmul.f32 %v1809_v40, %v1801_v23  ;;  %1642 = vmatprep.subr.bf16.mxu1 %v2016_v8  ;;  %v1791_v40 = vld [vmem:[%s2439_s11 + $0x10] sm:$0xff]  }
 0x4db   : > { %v680_v43 = vld [vmem:[#allocation4 + $0x4] sm:$0xf]  ;;  %v682_v46 = vld [vmem:[#allocation4 + $0xc] sm:$0xf] }
 0x4dc   : > { %v967_v44 = vsel %vm919_vm4, %v680_v43, 0  ;;  %v914_v45 = vpack.c.bf16 %v910_v41, %v910_v41  ;;  %v1059_v49 = vsel %vm919_vm4, %v682_v46, 0  ;;  %v1792_v41 = vld [vmem:[%s2439_s11 + $0x8] sm:$0xff]   ;;  %v1541_v43 = vld [vmem:[#allocation11] ss:$0 sm:$0xff] }
 0x4dd   : > { %1625 = vmatpush3.bf16.msra.mxu0 %v967_v44  ;;  %v1811_v48 = vpop.eup %1810 }
 0x4de   : > { %1633 = vmatmul.mubr.msk.bf16.vlgmr.msra.gmra.mxu1 %vm683_vm3, %v914_v45  ;;  %1636 = vmatprep.subr.bf16.mxu0 %v2016_v8  ;;  %v911_v50 = vmul.f32 %v1811_v48, %v1803_v26 }
 0x4df   : > { %1646 = vmatprep.mubr.msk.bf16.mxu1 %vm2017_vm1, %v2016_v8  ;;  %1643 = vmatpush3.bf16.msra.mxu1 %v1786_v52 }
 0x4e0   : > { %1627 = vmatmul.mubr.msk.bf16.vlgmr.msra.gmra.mxu0 %vm683_vm3, %v913_v47  ;;  %v915_v51 = vpack.c.bf16 %v911_v50, %v911_v50  ;;  %1644 = vmatprep.subr.bf16.mxu1 %v2016_v8 }
 0x4e1   : > { %1637 = vmatpush3.bf16.msra.mxu0 %v1059_v49  ;;  %1638 = vmatprep.mubr.msk.bf16.mxu0 %vm2017_vm1, %v2016_v8 }
 0x4e2   : > { %1650 = vmatprep.subr.bf16.mxu0 %v2016_v8 }
 0x4e3   : > { %1645 = vmatpush3.bf16.msra.mxu1 %v1787_v56 }
 0x4e4   : > { %1658 = vmatprep.subr.bf16.mxu1 %v2016_v8 }
 0x4e8   : > { %1639 = vmatmul.mubr.msk.bf16.vlgmr.msra.gmra.mxu0 %vm683_vm3, %v915_v51 }
 0x4e9   : > { %1654 = vmatprep.mubr.msk.bf16.mxu0 %vm2017_vm1, %v2016_v8  ;;  %1651 = vmatpush3.bf16.msra.mxu0 %v1788_v29 }
 0x4ea   : > { %1652 = vmatprep.subr.bf16.mxu0 %v2016_v8 }
 0x4ed   : > { %1653 = vmatpush3.bf16.msra.mxu0 %v1789_v30 }
 0x596   : > { %v957_v53 = vpop.f32.mrf.mxu1 }
 0x598   : > { %v1622_v54 = vpop.f32.mrf.mxu1 }
 0x599   : > { %v1545_v54 = vld [vmem:[%s2440_s12] ss:$0 sm:$0xff] }
 0x59a   : > { %v960_v55 = vpop.f32.mrf.mxu1 }
 0x59c   : > { %v1623_v57 = vpop.f32.mrf.mxu1 }
 0x59e   : > { %v1049_v58 = vpop.f32.mrf.mxu1 }
 0x59f   : > { %1106 = vrot.lane.b32.xlu1 %v1049_v58, %s2029_s21  ;;  %s496_s21 = sand.u32 1, %s1992_s26  }
 0x5a0   : > { %v1003_v59 = vpop.f32.mrf.mxu0  ;;  %v1634_v60 = vpop.f32.mrf.mxu1  ;;  %s1378_s28 = scalar_lea.sflag [#allocation7], %s496_s21 }
 0x5a1   : > { %1102 = vrot.lane.b32.xlu0 %v1003_v59, %s2030_s23  ;;  %s1518_s23 = sshll.u32 %s496_s21, 3 }
 0x5a2   : > { %v1628_v61 = vpop.f32.mrf.mxu0  ;;  %v1052_v62 = vpop.f32.mrf.mxu1  ;;  %s498_s24 = scalar_lea.vmem [#allocation13], %s1518_s23  ;;  %s1926_s23 = scalar_lea.vmem %s1925_s19, 256 }
 0x5a3   : > { %s1392_s29 = sshll.u32 %s498_s24, 4  ;;  %s2383_s29 = int_to_ptr.vmem [resolvable:$true] %s1392_s29 }
 0x5a4   : > { %v1006_v63 = vpop.f32.mrf.mxu0  ;;  %v1635_v1 = vpop.f32.mrf.mxu1  ;;  %s1920_s8 = scalar_lea.vmem %s2383_s29, 128  ;;  %p1927_p9 = scmp.lt.s32.totalorder %s2383_s29, %s1925_s19 }
 0x5a5   : > { %p1921_p13 = scmp.ne.s32.totalorder %s2383_s29, %s1920_s8  ;;  %p1928_p12 = scmp.lt.s32.totalorder %s1926_s23, %s1920_s8 }
 0x5a6   : > { %v1629_v2 = vpop.f32.mrf.mxu0 }
 0x5a7   : > { %p1922_p4 = pnand %p1921_p13, %p2462_p0  ;;  %p1929_p1 = por %p1928_p12, %p1927_p9 }
 0x5a8   : > { %v1095_v3 = vpop.f32.mrf.mxu0 }
 0x5a9   : > { %1110 = vrot.lane.b32.xlu0 %v1095_v3, %s2031_s27  ;;  %p1923_p11 = pneg %p1922_p4 }
 0x5aa   : > { %v1640_v4 = vpop.f32.mrf.mxu0 }
 0x5ab   : > { %p1930_p2 = pnand %p1929_p1, %p1923_p11 }
 0x5ac   : > { %v1098_v5 = vpop.f32.mrf.mxu0 }
 0x5ae   : > { %v1641_v6 = vpop.f32.mrf.mxu0 }
 0x611   : > { %v1107_v10 = vpop.permute.xlu1 %1106 }
 0x613   : > { %v1103_v7 = vpop.permute.xlu0 %1102 }
 0x614   : > { %v1113_v9 = vsel %vm683_vm3, %v957_v53, %v1103_v7 }
 0x615   : > { %v1115_v11 = vsel %vm1114_vm5, %v1113_v9, %v1107_v10 }
 0x61b   : > { %v1111_v12 = vpop.permute.xlu0 %1110 }
 0x61c   : > { %v1117_v13 = vsel %vm1116_vm6, %v1115_v11, %v1111_v12 }
 0x61d   : > { %v1118_v14 = vpack.c.bf16 %v1117_v13, %v1117_v13 }
 0x61f   : > { %1647 = vmatmul.mubr.msk.bf16.vlgmr.msra.gmra.mxu1 %vm511_vm0, %v1118_v14 }
 0x620   : > { %1666 = vmatprep.mubr.msk.bf16.mxu1 %vm2017_vm1, %v2016_v8  ;;  %1659 = vmatpush3.bf16.msra.mxu1 %v1790_v39 }
 0x621   : > { %1660 = vmatprep.subr.bf16.mxu1 %v2016_v8 }
 0x624   : > { %1661 = vmatpush3.bf16.msra.mxu1 %v1791_v40 }
 0x625   : > { %1662 = vmatprep.subr.bf16.mxu1 %v2016_v8 }
 0x628   : > { %1663 = vmatpush3.bf16.msra.mxu1 %v1792_v41 }
 0x629   : > { %1664 = vmatprep.subr.bf16.mxu1 %v2016_v8 }
 0x62c   : > { %1665 = vmatpush3.bf16.msra.mxu1 %v1793_v42 }
 0x6df   : > { %v1180_v16 = vpop.f32.mrf.mxu1 }
 0x6e0   : > { %v1181_v17 = vadd.f32 %v1535_v15, %v1180_v16 }
 0x6e1   : > { %v1648_v18 = vpop.f32.mrf.mxu1 }
 0x6e2   : > { %v2349_v19 = vadd.f32 %v1181_v17, %v2227_v0 }
 0x6e3   : > { %v1183_v20 = vpop.f32.mrf.mxu1 }
 0x6e4   : > { %v1191_v21 = vsel %vm511_vm0, %v2349_v19, 0.0 }
 0x6e5   : > { %1192 = vadd.xlane.f32.xlu1 %v1191_v21  ;;  %v1649_v22 = vpop.f32.mrf.mxu1 }
 0x76e   : > { %v1193_v23 = vpop.xlane.xlu1 %1192 }
 0x76f   : > { %v1195_v25 = vmul.f32 0.03125, %v1193_v23 }
 0x771   : > { %v1196_v26 = vsub.f32 %v2349_v19, %v1195_v25 }
 0x773   : > { %v1197_v27 = vmul.f32 %v1196_v26, %v1196_v26 }
 0x775   : > { %v1198_v28 = vsel %vm511_vm0, %v1197_v27, 0.0 }
 0x776   : > { %1199 = vadd.xlane.f32.xlu0 %v1198_v28 }
 0x7ff   : > { %v1200_v0 = vpop.xlane.xlu0 %1199 }
 0x800   : > { %v1201_v31 = vmul.f32 0.03125, %v1200_v0 }
 0x802   : > { %v1202_v32 = vadd.f32 1e-05, %v1201_v31 }
 0x804   : > { %1812 = vrsqrt.f32 %v1202_v32 }
 0x811   : > { %v1813_v33 = vpop.eup %1812 }
 0x812   : > { %v1204_v35 = vmul.f32 %v1813_v33, %v1196_v26 }
 0x814   : > { %v1211_v24 = vmul.f32 %v1539_v34, %v1204_v35 }
 0x816   : > { %v1218_v37 = vadd.f32 %v1540_v36, %v1211_v24 }
 0x818   : > { %v1219_v38 = vpack.c.bf16 %v1218_v37, %v1218_v37 }
 0x81a   : > { %1655 = vmatmul.mubr.msk.bf16.vlgmr.msra.gmra.mxu0 %vm511_vm0, %v1219_v38 }
 0x8da   : > { %v1280_v44 = vpop.f32.mrf.mxu0 }
 0x8db   : > { %v1281_v45 = vadd.f32 %v1541_v43, %v1280_v44 }
 0x8dc   : > { %v1656_v46 = vpop.f32.mrf.mxu0 }
 0x8dd   : > { %v1287_v47 = vmul.f32 0.70710677, %v1281_v45  ;;  %v1286_v51 = vmul.f32 0.5, %v1281_v45 }
 0x8de   : > { %v1283_v48 = vpop.f32.mrf.mxu0 }
 0x8df   : > { %1814 = verf.f32 %v1287_v47 }
 0x8e0   : > { %v1657_v49 = vpop.f32.mrf.mxu0 }
 0x8ec   : > { %v1815_v50 = vpop.eup %1814 }
 0x8ed   : > { %v1289_v52 = vadd.f32 1.0, %v1815_v50 }
 0x8ef   : > { %v1290_v53 = vmul.f32 %v1289_v52, %v1286_v51 }
 0x8f1   : > { %v1291_v8 = vpack.c.bf16 %v1290_v53, %v1290_v53 }
 0x8f3   : > { %1667 = vmatmul.mubr.msk.bf16.vlgmr.msra.gmra.mxu1 %vm1331_vm7, %v1291_v8 }
 0x9b3   : > { %v1369_v55 = vpop.f32.mrf.mxu1 }
 0x9b4   : > { %v1370_v56 = vadd.f32 %v1545_v54, %v1369_v55 }
 0x9b5   : > { %v1668_v57 = vpop.f32.mrf.mxu1 }
 0x9b6   : > { %v1375_v58 = vadd.f32 %v1370_v56, %v2349_v19 }
 0x9b7   : > { %v1372_v59 = vpop.f32.mrf.mxu1 }
 0x9b8   : > { %1376 = vst.msk [vmem:[%s498_s24] sm:$0xff] %vm511_vm0, %v1375_v58 }
 0x9b9   : > { %v1669_v60 = vpop.f32.mrf.mxu1 }
 0x9ba   : > { %1933 = shalt.err (!%p1930_p2)
}
 0x9bb   : > { %s1934_s27 = scalar_lea.hbm %s2381_s7, 128  ;;  %s1938_s14 = scalar_lea.hbm %s2441_s13, 256 }
 0x9bc   : > { %p1935_p5 = scmp.ne.s32.totalorder %s2381_s7, %s1934_s27  ;;  %p1939_p6 = scmp.lt.s32.totalorder %s2381_s7, %s2441_s13 }
 0x9bd   : > { %p1940_p7 = scmp.lt.s32.totalorder %s1938_s14, %s1934_s27 }
 0x9be   : > { %p1936_p3 = pnand %p1935_p5, %p2462_p0 }
 0x9bf   : > { %p1941_p10 = por %p1940_p7, %p1939_p6 }
 0x9c0   : > { %p1937_p8 = pneg %p1936_p3 }
 0x9c2   : > { %p1942_p13 = pnand %p1941_p10, %p1937_p8 }
 0x9c4   : > { %1945 = shalt.err (!%p1942_p13)
}
 0x9c5   : > { %1686 = dma.vmem_to_hbm [thread:$0]  (%p2462_p0), %s2383_s29, 128, %s2381_s7, %s1378_s28  }
 0x9c6 PF: > { %p1713_p4 = scmp.ge.s32.totalorder %s2008_s30, 2  ;;  %s1404_s16 = sand.u32 1, %s1988_s25  }
 0x9c7   : > { %p2463_p11 = scmp.ne.s32.totalorder %s2454_s20, 0  ;;  %s1405_s8 = scalar_lea.sflag [#allocation7], %s1404_s16 }
 0x9c9   : > { %p1702_p9 = pnand %p1713_p4, %p2463_p11 }
 0x9cb   : > { %p1703_p12 = pneg %p1702_p9 }
 0x9cd   : > { %1983 = dma.done.wait (%p1703_p12), %s1405_s8, 128  }
 0x9ce   : > { %1985 = vsyncadd (%p1703_p12), %s1405_s8, 4294967168  ;;  %s29_s30 = sadd.s32 1, %s2008_s30   ;;  %s2464_s18 = sld [smem:[#allocation18_spill]] }
 0x9cf   : > { %p26_p1 = scmp.ge.s32.totalorder %s29_s30, 4   ;;  %s2465_s27 = sld [smem:[#allocation21_spill]] }
 0x9d0   : > { %s2466_s28 = sld [smem:[#allocation19_spill]]  ;;  %s2468_s25 = smov %s1992_s26 }
 0x9d1   : > { %s2467_s29 = sld [smem:[#allocation20_spill]]  ;;  %28 = sbr.rel (!%p26_p1) target bundleno = 10 (0xa), region = 139 }
 0x9d4   : > { %s2469_s26 = smov %s2464_s18 }
 0x9d6   :  { %1410 = vsyncpa [#allocation6], 1 }
 0x9d7   :  { %1412 = vsyncpa [#allocation6 + $0x1], 1 }
 0x9d8   :  { %1413 = vsyncpa [#allocation9], 1 }
 0x9d9   :  { %1414 = vsyncpa [#allocation12], 1 }
 0x9da   :  { %1415 = vsyncpa [#allocation7], 1 }
 0x9db   :  { %1417 = vsyncpa [#allocation7 + $0x1], 1 }

</bundles_post_ra>
